<compile_context>
chip_gen: v7x
topology: tpu7x:2x2x1
jax: 0.10.0
libtpu: 0.0.40
codegen_flags: <defaults>
</compile_context>

<pallas_src>
import functools
import math

import jax
import jax.numpy as jnp
from jax import lax
from jax.experimental import pallas as pl
from jax.experimental.pallas import tpu as pltpu


# ----------------------------- small helpers --------------------------------

def _round_up(x, m):
    return ((x + m - 1) // m) * m


def _pick_tile(dim, target, *aligns):
    """Largest tile <= target that divides `dim` and is a multiple of one of
    `aligns` (tried in order). Falls back to the full dimension."""
    if dim <= target:
        return dim
    for align in aligns:
        cand = (target // align) * align
        while cand >= align:
            if dim % cand == 0:
                return cand
            cand -= align
    return dim


def _vmem_limit_bytes():
    # Generation-specific VMEM budgets: ~96 MiB on 128-MiB parts (v4/v5e/v6e),
    # <=48 MiB on v7x (64 MiB VMEM per TensorCore).
    try:
        kind = jax.devices()[0].device_kind.lower()
    except Exception:
        kind = ""
    if any(t in kind for t in ("v4", "v5", "v6")):
        return 96 * 1024 * 1024
    return 48 * 1024 * 1024


# --------------------- tiled linear (x @ W_t, no bias) ----------------------

def _matmul_kernel(x_ref, w_ref, o_ref, acc_ref):
    @pl.when(pl.program_id(2) == 0)
    def _():
        acc_ref[...] = jnp.zeros_like(acc_ref)

    acc_ref[...] += jnp.dot(
        x_ref[...], w_ref[...], preferred_element_type=jnp.float32
    )

    @pl.when(pl.program_id(2) == pl.num_programs(2) - 1)
    def _():
        o_ref[...] = acc_ref[...].astype(o_ref.dtype)


def linear_no_bias(x2d, w_t, *, tm=512, tn=512, tk=1024):
    """y = x2d @ w_t   (w_t already transposed: shape (in_features, out_features)).
    Inputs are padded to tile multiples (zeros in K contribute nothing)."""
    M, K = x2d.shape
    K2, N = w_t.shape
    assert K == K2
    tm = min(tm, _round_up(M, 8))
    tn = min(tn, _round_up(N, 128))
    tk = min(tk, _round_up(K, 128))
    Mp, Np, Kp = _round_up(M, tm), _round_up(N, tn), _round_up(K, tk)
    if (Mp, Kp) != (M, K):
        x2d = jnp.pad(x2d, ((0, Mp - M), (0, Kp - K)))
    if (Kp, Np) != (K, N):
        w_t = jnp.pad(w_t, ((0, Kp - K), (0, Np - N)))
    grid = (Mp // tm, Np // tn, Kp // tk)
    out = pl.pallas_call(
        _matmul_kernel,
        out_shape=jax.ShapeDtypeStruct((Mp, Np), x2d.dtype),
        grid_spec=pltpu.PrefetchScalarGridSpec(
            num_scalar_prefetch=0,
            grid=grid,
            in_specs=[
                pl.BlockSpec((tm, tk), lambda i, j, k: (i, k)),
                pl.BlockSpec((tk, tn), lambda i, j, k: (k, j)),
            ],
            out_specs=pl.BlockSpec((tm, tn), lambda i, j, k: (i, j)),
            scratch_shapes=[pltpu.VMEM((tm, tn), jnp.float32)],
        ),
        compiler_params=pltpu.CompilerParams(
            dimension_semantics=("parallel", "parallel", "arbitrary"),
            vmem_limit_bytes=_vmem_limit_bytes(),
        ),
    )(x2d, w_t)
    if (Mp, Np) != (M, N):
        out = out[:M, :N]
    return out


# --------- fused RoPE + head split + layout change (one streaming pass) -----

def _rope_split_kernel(qkv_ref, cos_ref, sin_ref, q_ref, k_ref, v_ref,
                       *, num_heads, head_dim, q_scale):
    HD = head_dim
    HDh = HD // 2
    H = num_heads * HD
    cos = cos_ref[0].astype(jnp.float32)          # (ts, HD/2)
    sin = sin_ref[0].astype(jnp.float32)
    # fold 1/sqrt(head_dim) into q's rotation coefficients (in-kernel, once)
    cq = cos * q_scale
    sq = sin * q_scale
    for h in range(num_heads):                    # static unroll over heads
        oq = h * HD
        ok = H + h * HD
        ov = 2 * H + h * HD
        q1 = qkv_ref[0, :, oq:oq + HDh].astype(jnp.float32)
        q2 = qkv_ref[0, :, oq + HDh:oq + HD].astype(jnp.float32)
        k1 = qkv_ref[0, :, ok:ok + HDh].astype(jnp.float32)
        k2 = qkv_ref[0, :, ok + HDh:ok + HD].astype(jnp.float32)
        # x_rot = x*cos + rotate_half(x)*sin  (cos/sin halves are identical)
        q_ref[0, h] = jnp.concatenate(
            [q1 * cq - q2 * sq, q2 * cq + q1 * sq], axis=-1).astype(q_ref.dtype)
        k_ref[0, h] = jnp.concatenate(
            [k1 * cos - k2 * sin, k2 * cos + k1 * sin], axis=-1).astype(k_ref.dtype)
        v_ref[0, h] = qkv_ref[0, :, ov:ov + HD]
    # TODO(synk): for head_dim == 128 the half-lane slices could be replaced by
    # a single pltpu.roll(HD//2) on the XLU slot; kept as half-splits for
    # robustness at arbitrary head_dim.


def rope_split_heads(qkv, cos_half, sin_half, *, num_heads, head_dim, q_scale,
                     ts=256):
    """qkv: (B, S, 3H) -> q, k, v each (B, NH, S, HD), RoPE applied to q, k and
    1/sqrt(HD) folded into q. One HBM read + one HBM write pass."""
    B, S, threeH = qkv.shape
    H = num_heads * head_dim
    assert threeH == 3 * H
    HDh = head_dim // 2
    ts = _pick_tile(S, ts, 8)
    ns = S // ts
    kernel = functools.partial(
        _rope_split_kernel, num_heads=num_heads, head_dim=head_dim,
        q_scale=q_scale)
    out_sds = jax.ShapeDtypeStruct((B, num_heads, S, head_dim), qkv.dtype)
    out_spec = pl.BlockSpec((1, num_heads, ts, head_dim),
                            lambda b, si: (b, 0, si, 0))
    q, k, v = pl.pallas_call(
        kernel,
        out_shape=(out_sds, out_sds, out_sds),
        grid_spec=pltpu.PrefetchScalarGridSpec(
            num_scalar_prefetch=0,
            grid=(B, ns),
            in_specs=[
                pl.BlockSpec((1, ts, threeH), lambda b, si: (b, si, 0)),
                pl.BlockSpec((1, ts, HDh), lambda b, si: (b, si, 0)),
                pl.BlockSpec((1, ts, HDh), lambda b, si: (b, si, 0)),
            ],
            out_specs=(out_spec, out_spec, out_spec),
        ),
        compiler_params=pltpu.CompilerParams(
            dimension_semantics=("parallel", "parallel"),
            vmem_limit_bytes=_vmem_limit_bytes(),
        ),
    )(qkv, cos_half, sin_half)
    return q, k, v


# ----------------------- flash attention (online softmax) -------------------

def _flash_attn_kernel(*refs, causal, has_mask, min_value, block_q, block_k):
    if has_mask:
        q_ref, k_ref, v_ref, mask_ref, o_ref, m_sc, l_sc, acc_sc = refs
    else:
        q_ref, k_ref, v_ref, o_ref, m_sc, l_sc, acc_sc = refs

    qi = pl.program_id(1)
    ki = pl.program_id(2)

    @pl.when(ki == 0)
    def _():
        m_sc[...] = jnp.full_like(m_sc, -jnp.inf)
        l_sc[...] = jnp.zeros_like(l_sc)
        acc_sc[...] = jnp.zeros_like(acc_sc)

    def update():
        q = q_ref[0, 0]                                  # (tq, HD), already scaled
        k = k_ref[0, 0]                                  # (tk, HD)
        v = v_ref[0, 0]                                  # (tk, HD)
        # QK^T with f32 accumulation; operands stay in native (bf16) dtype.
        s = lax.dot_general(
            q, k, (((1,), (1,)), ((), ())), preferred_element_type=jnp.float32)
        if has_mask:
            s = s + mask_ref[0, 0].astype(jnp.float32)
        s = jnp.maximum(s, min_value)                    # torch.max(attn, min_value)
        if causal:
            # causal mask generated in-kernel: no O(S^2) mask DMA from HBM
            rows = qi * block_q + lax.broadcasted_iota(jnp.int32, s.shape, 0)
            cols = ki * block_k + lax.broadcasted_iota(jnp.int32, s.shape, 1)
            s = jnp.where(cols <= rows, s, min_value)

        m_prev = m_sc[...]
        m_new = jnp.maximum(m_prev, jnp.max(s, axis=-1, keepdims=True))
        alpha = jnp.exp(m_prev - m_new)
        p = jnp.exp(s - m_new)                           # f32 softmax numerator
        l_sc[...] = alpha * l_sc[...] + jnp.sum(p, axis=-1, keepdims=True)
        acc_sc[...] = alpha * acc_sc[...] + jnp.dot(
            p.astype(v.dtype), v, preferred_element_type=jnp.float32)
        m_sc[...] = m_new

    if causal:
        # skip KV tiles that lie entirely above the diagonal (fully masked)
        @pl.when(ki * block_k <= qi * block_q + block_q - 1)
        def _():
            update()
    else:
        update()

    @pl.when(ki == pl.num_programs(2) - 1)
    def _():
        # approx reciprocal (EUP slot); ~1e-3 rel error in the normalization
        inv_l = pl.reciprocal(l_sc[...], approx=True)
        o_ref[0, 0] = (acc_sc[...] * inv_l).astype(o_ref.dtype)


def flash_attention(q, k, v, mask=None, *, causal=False, min_value=-1e6,
                    tq=512, tk=512):
    """q, k, v: (B, NH, S, HD). q must already carry the 1/sqrt(HD) scale.
    mask (optional): additive (B, 1, S, KS). Output: (B, NH, S, HD)."""
    B, NH, S, HD = q.shape
    KS = k.shape[2]
    has_mask = mask is not None
    tq = _pick_tile(S, tq, 8)
    # with an explicit mask, tk is the mask block's last dim -> keep it 128-aligned
    tk = _pick_tile(KS, tk, 128) if has_mask else _pick_tile(KS, tk, 128, 8)
    nq, nk = S // tq, KS // tk
    nh = NH  # captured by index maps; B and NH collapsed into one parallel axis

    q_spec = pl.BlockSpec((1, 1, tq, HD),
                          lambda g, qi, ki: (g // nh, g % nh, qi, 0))
    kv_spec = pl.BlockSpec((1, 1, tk, HD),
                           lambda g, qi, ki: (g // nh, g % nh, ki, 0))
    in_specs = [q_spec, kv_spec, kv_spec]
    inputs = [q, k, v]
    if has_mask:
        in_specs.append(pl.BlockSpec((1, 1, tq, tk),
                                     lambda g, qi, ki: (g // nh, 0, qi, ki)))
        inputs.append(mask)

    kernel = functools.partial(
        _flash_attn_kernel, causal=causal, has_mask=has_mask,
        min_value=min_value, block_q=tq, block_k=tk)

    return pl.pallas_call(
        kernel,
        out_shape=jax.ShapeDtypeStruct((B, NH, S, HD), q.dtype),
        grid_spec=pltpu.PrefetchScalarGridSpec(
            num_scalar_prefetch=0,
            grid=(B * NH, nq, nk),
            in_specs=in_specs,
            out_specs=pl.BlockSpec((1, 1, tq, HD),
                                   lambda g, qi, ki: (g // nh, g % nh, qi, 0)),
            scratch_shapes=[
                pltpu.VMEM((tq, 1), jnp.float32),     # running max m
                pltpu.VMEM((tq, 1), jnp.float32),     # running denom l
                pltpu.VMEM((tq, HD), jnp.float32),    # running accumulator
            ],
        ),
        compiler_params=pltpu.CompilerParams(
            dimension_semantics=("parallel", "parallel", "arbitrary"),
            vmem_limit_bytes=_vmem_limit_bytes(),
        ),
    )(*inputs)


# -------- output projection reading the head-major layout directly ----------

def _oproj_kernel(x_ref, w_ref, o_ref, acc_ref):
    @pl.when(pl.program_id(2) == 0)
    def _():
        acc_ref[...] = jnp.zeros_like(acc_ref)

    acc_ref[...] += jnp.dot(
        x_ref[0, 0], w_ref[...], preferred_element_type=jnp.float32)

    @pl.when(pl.program_id(2) == pl.num_programs(2) - 1)
    def _():
        o_ref[...] = acc_ref[...].astype(o_ref.dtype)


def o_proj_from_heads(attn, w_t, *, tm=256, tn=512):
    """out2d = reshape(transpose(attn,(0,2,1,3)), (B*S, H)) @ w_t, but the
    transpose is never materialized: the LHS tiles are read straight from the
    (B, NH, S, HD) layout, with the head axis as the K-reduction grid axis."""
    B, NH, S, HD = attn.shape
    H, N = w_t.shape
    assert H == NH * HD
    tm = _pick_tile(S, tm, 8)       # row tiles never straddle a batch boundary
    tn = _pick_tile(N, tn, 128)
    nsb = S // tm
    grid = (B * nsb, N // tn, NH)
    return pl.pallas_call(
        _oproj_kernel,
        out_shape=jax.ShapeDtypeStruct((B * S, N), attn.dtype),
        grid_spec=pltpu.PrefetchScalarGridSpec(
            num_scalar_prefetch=0,
            grid=grid,
            in_specs=[
                pl.BlockSpec((1, 1, tm, HD),
                             lambda i, j, k: (i // nsb, k, i % nsb, 0)),
                pl.BlockSpec((HD, tn), lambda i, j, k: (k, j)),
            ],
            out_specs=pl.BlockSpec((tm, tn), lambda i, j, k: (i, j)),
            scratch_shapes=[pltpu.VMEM((tm, tn), jnp.float32)],
        ),
        compiler_params=pltpu.CompilerParams(
            dimension_semantics=("parallel", "parallel", "arbitrary"),
            vmem_limit_bytes=_vmem_limit_bytes(),
        ),
    )(attn, w_t)


# ------------------------------ Module ---------------------------------------

class LongLlamaAttentionPallas:
    def __init__(self, hidden_size, num_heads, max_position_embeddings=2048,
                 rope_theta=10000.0, dtype=jnp.bfloat16, key=None):
        self.hidden_size = hidden_size
        self.num_heads = num_heads
        self.head_dim = hidden_size // num_heads
        assert self.head_dim * num_heads == hidden_size
        self.max_position_embeddings = max_position_embeddings
        self.rope_theta = rope_theta
        self.dtype = dtype

        key = jax.random.PRNGKey(0) if key is None else key
        kq, kk, kv, ko = jax.random.split(key, 4)
        init_std = hidden_size ** -0.5
        init = lambda k: init_std * jax.random.normal(
            k, (hidden_size, hidden_size), dtype=jnp.float32)
        # nn.Linear weights have shape (out_features, in_features)
        self.wq, self.wk, self.wv, self.wo = init(kq), init(kk), init(kv), init(ko)
        # pre-transposed (in, out) weights in bf16, computed ONCE at init;
        # Q/K/V fused into a single (H, 3H) weight for one projection pass.
        self.wqkv_t = jnp.concatenate(
            [self.wq.T, self.wk.T, self.wv.T], axis=1).astype(dtype)
        self.wo_t = self.wo.T.astype(dtype)

        # rotary half-caches (cos/sin of `freqs`; full cache is cat(freqs,freqs))
        inv_freq = 1.0 / (rope_theta ** (
            jnp.arange(0, self.head_dim, 2, dtype=jnp.float32) / self.head_dim))
        t = jnp.arange(max_position_embeddings, dtype=jnp.float32)
        freqs = jnp.einsum("i,j->ij", t, inv_freq)        # (max_pos, head_dim/2)
        self.cos_half_cached = jnp.cos(freqs)
        self.sin_half_cached = jnp.sin(freqs)

        # min_value logic from the reference (f32 score path -> -1e6)
        finfo_min = float(jnp.finfo(jnp.float32).min)
        self.min_value = finfo_min if -1000000.0 < finfo_min else -1000000.0

    def __call__(self, hidden_states, attention_mask=None, position_ids=None,
                 *, causal=False):
        B, S, H = hidden_states.shape
        NH, HD = self.num_heads, self.head_dim

        if position_ids is None:
            position_ids = jnp.broadcast_to(
                jnp.arange(S, dtype=jnp.int32)[None, :], (B, S))

        # fused QKV projection: one tiled/pipelined matmul over (H, 3H)
        x2d = hidden_states.astype(self.dtype).reshape(B * S, H)
        qkv = linear_no_bias(x2d, self.wqkv_t).reshape(B, S, 3 * H)

        # rel_pos_ids = position_ids - min over seq (use_positionals=True path);
        # with no KV cache the query slice rel[:, -S:] equals rel, so one gather.
        rel = position_ids - jnp.min(position_ids, axis=-1, keepdims=True)
        cos = self.cos_half_cached[rel]                   # (B, S, HD/2) f32
        sin = self.sin_half_cached[rel]

        # fused RoPE + head split + layout change; 1/sqrt(HD) folded into q
        q, k, v = rope_split_heads(
            qkv, cos, sin, num_heads=NH, head_dim=HD,
            q_scale=1.0 / math.sqrt(HD))

        if attention_mask is not None:
            # general additive-mask path (re-introduces the O(S^2) mask stream);
            # prefer attention_mask=None + causal=True for the fast path.
            attn = flash_attention(q, k, v, mask=attention_mask,
                                   causal=False, min_value=self.min_value)
        else:
            attn = flash_attention(q, k, v, mask=None,
                                   causal=causal, min_value=self.min_value)

        # output projection reads (B, NH, S, HD) directly -> no transpose pass
        out = o_proj_from_heads(attn, self.wo_t).reshape(B, S, H)
        out = out.astype(hidden_states.dtype)
        # returns (attn_output, attn_weights=None, past_key_value=None, mem_cache=None)
        return out, None, None, None
        # TODO(synk): mem_cache / past_key_value / attention_grouping /
        # output_attentions branches are cache-management control flow, omitted.


# ------------------------------ Reference (pure JAX) -------------------------

def _reference(mod, hidden_states, attention_mask, position_ids):
    dt = mod.dtype
    f32 = jnp.float32
    B, S, H = hidden_states.shape
    NH, HD = mod.num_heads, mod.head_dim
    x = hidden_states.astype(dt).reshape(B * S, H)
    qkv = (x.astype(f32) @ mod.wqkv_t.astype(f32)).astype(dt)
    qkv = qkv.reshape(B, S, 3, NH, HD)
    q = qkv[:, :, 0].transpose(0, 2, 1, 3)
    k = qkv[:, :, 1].transpose(0, 2, 1, 3)
    v = qkv[:, :, 2].transpose(0, 2, 1, 3)

    rel = position_ids - jnp.min(position_ids, axis=-1, keepdims=True)
    cos = jnp.concatenate([mod.cos_half_cached] * 2, -1)[rel][:, None]  # (B,1,S,HD)
    sin = jnp.concatenate([mod.sin_half_cached] * 2, -1)[rel][:, None]

    def rot_half(t):
        return jnp.concatenate([-t[..., HD // 2:], t[..., :HD // 2]], -1)

    inv_sqrt_d = 1.0 / math.sqrt(HD)
    q = ((q.astype(f32) * cos + rot_half(q.astype(f32)) * sin) * inv_sqrt_d).astype(dt)
    k = (k.astype(f32) * cos + rot_half(k.astype(f32)) * sin).astype(dt)

    scores = jnp.einsum("bhqd,bhkd->bhqk", q.astype(f32), k.astype(f32))
    scores = scores + attention_mask
    scores = jnp.maximum(scores, mod.min_value)
    p = jax.nn.softmax(scores, axis=-1).astype(dt)
    out = jnp.einsum("bhqk,bhkd->bhqd", p.astype(f32), v.astype(f32)).astype(dt)
    out = out.transpose(0, 2, 1, 3).reshape(B * S, H)
    out = (out.astype(f32) @ mod.wo_t.astype(f32)).astype(dt)
    return out.reshape(B, S, H).astype(hidden_states.dtype)


# ------------------------------ Main ------------------------------------------

if __name__ == "__main__":
    key = jax.random.PRNGKey(0)
    k_w, k_x = jax.random.split(key)

    B, S, H, NH = 2, 8, 32, 4  # head_dim = 8
    mod = LongLlamaAttentionPallas(hidden_size=H, num_heads=NH, key=k_w)

    hidden_states = jax.random.normal(k_x, (B, S, H), dtype=jnp.float32)
    position_ids = jnp.broadcast_to(jnp.arange(S, dtype=jnp.int32)[None, :], (B, S))

    # additive causal mask, as prepared by the surrounding LongLlama model
    neg = float(jnp.finfo(jnp.float32).min)
    causal_add = jnp.where(
        jnp.arange(S)[:, None] >= jnp.arange(S)[None, :], 0.0, neg
    ).astype(jnp.float32)
    attention_mask = jnp.broadcast_to(causal_add[None, None, :, :], (B, 1, S, S))

    # fast path: causal mask generated inside the flash-attention kernel
    out_causal, _, _, _ = mod(hidden_states, None, position_ids, causal=True)
    # general path: arbitrary additive mask streamed through a BlockSpec
    out_masked, _, _, _ = mod(hidden_states, attention_mask, position_ids)
    jax.block_until_ready((out_causal, out_masked))

    ref = _reference(mod, hidden_states, attention_mask, position_ids)
    assert out_causal.shape == (B, S, H)
    # tolerance covers bf16 weights/activations + EUP approx-reciprocal
    assert jnp.allclose(out_causal, ref, atol=2e-2, rtol=2e-2), "causal path mismatch"
    assert jnp.allclose(out_masked, ref, atol=2e-2, rtol=2e-2), "masked path mismatch"

    print("KERNEL_OK")
</pallas_src>

<mosaic_0001>
module attributes {stable_mosaic.version = 11 : i64} {
  func.func @_matmul_kernel(%arg0: i32, %arg1: i32, %arg2: i32, %arg3: memref<16x128xbf16, #tpu.memory_space<vmem>>, %arg4: memref<128x128xbf16, #tpu.memory_space<vmem>>, %arg5: memref<16x128xbf16, #tpu.memory_space<vmem>>, %arg6: memref<16x128xf32, #tpu.memory_space<vmem>>) attributes {dimension_semantics = [#tpu.dimension_semantics<parallel>, #tpu.dimension_semantics<parallel>, #tpu.dimension_semantics<arbitrary>], iteration_bounds = array<i64: 1, 1, 1>, scalar_prefetch = 0 : i64, scratch_operands = 1 : i64, tpu.core_type = #tpu.core_type<tc>, window_params = [{transform_indices = @transform_0, window_bounds = array<i64: 16, 128>}, {transform_indices = @transform_1, window_bounds = array<i64: 128, 128>}, {transform_indices = @transform_2, window_bounds = array<i64: 16, 128>}]} {
    %c0_i32 = arith.constant 0 : i32
    %0 = arith.cmpi eq, %arg2, %c0_i32 : i32
    %1 = arith.extui %0 : i1 to i32
    %c0_i32_0 = arith.constant 0 : i32
    %2 = arith.cmpi ne, %1, %c0_i32_0 : i32
    scf.if %2 {
      %cst_10 = arith.constant 0.000000e+00 : f32
      %12 = vector.broadcast %cst_10 : f32 to vector<16x128xf32>
      %c0_11 = arith.constant 0 : index
      %c0_12 = arith.constant 0 : index
      %13 = vector.load %arg6[%c0_11, %c0_12] : memref<16x128xf32, #tpu.memory_space<vmem>>, vector<16x128xf32>
      tpu.vector_store %arg6[%c0_11, %c0_12], %12 {strides = array<i32>} : memref<16x128xf32, #tpu.memory_space<vmem>>, vector<16x128xf32>,
    } else {
    }
    %c0 = arith.constant 0 : index
    %c0_1 = arith.constant 0 : index
    %3 = vector.load %arg6[%c0, %c0_1] : memref<16x128xf32, #tpu.memory_space<vmem>>, vector<16x128xf32>
    %c0_2 = arith.constant 0 : index
    %c0_3 = arith.constant 0 : index
    %4 = vector.load %arg3[%c0_2, %c0_3] : memref<16x128xbf16, #tpu.memory_space<vmem>>, vector<16x128xbf16>
    %c0_4 = arith.constant 0 : index
    %c0_5 = arith.constant 0 : index
    %5 = vector.load %arg4[%c0_4, %c0_5] : memref<128x128xbf16, #tpu.memory_space<vmem>>, vector<128x128xbf16>
    %cst = arith.constant dense<0.000000e+00> : vector<16x128xf32>
    %6 = tpu.matmul %4, %5, %cst {dimension_numbers = #tpu.dot_dimension_numbers<[1], [0], [0], [1], [0, 0, 1, 1], [], []>} : vector<16x128xbf16>, vector<128x128xbf16>, vector<16x128xf32> -> vector<16x128xf32>
    %7 = arith.addf %3, %6 : vector<16x128xf32>
    %c0_6 = arith.constant 0 : index
    %c0_7 = arith.constant 0 : index
    %8 = vector.load %arg6[%c0_6, %c0_7] : memref<16x128xf32, #tpu.memory_space<vmem>>, vector<16x128xf32>
    tpu.vector_store %arg6[%c0_6, %c0_7], %7 {strides = array<i32>} : memref<16x128xf32, #tpu.memory_space<vmem>>, vector<16x128xf32>,
    %c0_i32_8 = arith.constant 0 : i32
    %9 = arith.cmpi eq, %arg2, %c0_i32_8 : i32
    %10 = arith.extui %9 : i1 to i32
    %c0_i32_9 = arith.constant 0 : i32
    %11 = arith.cmpi ne, %10, %c0_i32_9 : i32
    scf.if %11 {
      %c0_10 = arith.constant 0 : index
      %c0_11 = arith.constant 0 : index
      %12 = vector.load %arg6[%c0_10, %c0_11] : memref<16x128xf32, #tpu.memory_space<vmem>>, vector<16x128xf32>
      %13 = arith.truncf %12 : vector<16x128xf32> to vector<16x128xbf16>
      %c0_12 = arith.constant 0 : index
      %c0_13 = arith.constant 0 : index
      %14 = vector.load %arg5[%c0_12, %c0_13] : memref<16x128xbf16, #tpu.memory_space<vmem>>, vector<16x128xbf16>
      tpu.vector_store %arg5[%c0_12, %c0_13], %13 {strides = array<i32>} : memref<16x128xbf16, #tpu.memory_space<vmem>>, vector<16x128xbf16>,
    } else {
    }
    return
  }
  func.func @transform_0(%arg0: i32, %arg1: i32, %arg2: i32) -> (i32, i32) {
    %c0_i32 = arith.constant 0 : i32
    return %arg0, %arg2 : i32, i32
  }
  func.func @transform_1(%arg0: i32, %arg1: i32, %arg2: i32) -> (i32, i32) {
    %c0_i32 = arith.constant 0 : i32
    return %arg2, %arg1 : i32, i32
  }
  func.func @transform_2(%arg0: i32, %arg1: i32, %arg2: i32) -> (i32, i32) {
    %c0_i32 = arith.constant 0 : i32
    return %arg0, %arg1 : i32, i32
  }
}

</mosaic_0001>

<bundles_post_ra>
// kernel: tpu_custom_call.1
= control target key start
LH: loop header
LB: loop body
LE: loop exit
PB: predicated region body
PF: predicated region fallthrough
CT: control target
= control target key end

     0   :  { %7 = vsyncpa [#allocation4], 0  ;;  %s401_s0 = inlined_call_operand.hbm [shape: bf16[16,128], index: 0, kind: input, shape index: {}]   ;;  %s402_s1 = inlined_call_operand.hbm [shape: bf16[128,128], index: 1, kind: input, shape index: {}]   ;;  %s403_s2 = inlined_call_operand.hbm [shape: bf16[16,128], index: 2, kind: output, shape index: {}]  }
   0x1   :  { %8 = vsyncpa [#allocation7], 0 }
   0x2   :  { %9 = vsyncpa [#allocation5], 0  ;;  %s334_s9 = smov [#allocation3]   ;;  %s262_s13 = scalar_lea.hbm %s401_s0, 128 }
   0x3   :  { %s15_s10 = sshll.u32 %s334_s9, 4  ;;  %p263_p0 = scmp.ne.s32.totalorder %s401_s0, %s262_s13  ;;  %s16_s10 = int_to_ptr.vmem [resolvable:$true] %s15_s10 }
   0x4   :  { %p266_p1 = scmp.lt.u32.totalorder %s262_s13, %s401_s0 }
   0x6   :  { %p268_p2 = pnand %p266_p1, %p263_p0 }
   0x8   :  { %271 = shalt.err (!%p268_p2)
}
   0x9   :  { %s272_s18 = scalar_lea.vmem %s16_s10, 128  ;;  %p277_p4 = scmp.lt.s32.totalorder %s16_s10, %s16_s10 }
   0xa   :  { %p273_p3 = scmp.ne.s32.totalorder %s16_s10, %s272_s18  ;;  %p278_p5 = scmp.lt.s32.totalorder %s272_s18, %s272_s18 }
   0xc   :  { %p279_p6 = por %p278_p5, %p277_p4 }
   0xe   :  { %p280_p7 = pnand %p279_p6, %p273_p3 }
  0x10   :  { %283 = shalt.err (!%p280_p7)
}
  0x11   :  { %s335_s19 = smov 64   ;;  %s336_s20 = smov 4  }
  0x12   :  { %21 = dma.hbm_to_vmem [thread:$0]  %s401_s0, 128, %s16_s10, [#allocation4], %s335_s19, %s335_s19, %s336_s20  }
  0x13   :  { %s337_s23 = smov [#allocation6]   ;;  %s284_s27 = scalar_lea.hbm %s402_s1, 1024 }
  0x14   :  { %s27_s24 = sshll.u32 %s337_s23, 4  ;;  %p285_p8 = scmp.ne.s32.totalorder %s402_s1, %s284_s27  ;;  %s28_s24 = int_to_ptr.vmem [resolvable:$true] %s27_s24 }
  0x15   :  { %p288_p9 = scmp.lt.u32.totalorder %s284_s27, %s402_s1 }
  0x17   :  { %p290_p10 = pnand %p288_p9, %p285_p8 }
  0x19   :  { %293 = shalt.err (!%p290_p10)
}
  0x1a   :  { %s294_s4 = scalar_lea.vmem %s28_s24, 1024  ;;  %p299_p12 = scmp.lt.s32.totalorder %s28_s24, %s28_s24 }
  0x1b   :  { %p295_p11 = scmp.ne.s32.totalorder %s28_s24, %s294_s4  ;;  %p300_p13 = scmp.lt.s32.totalorder %s294_s4, %s294_s4 }
  0x1d   :  { %p301_p0 = por %p300_p13, %p299_p12 }
  0x1f   :  { %p302_p1 = pnand %p301_p0, %p295_p11 }
  0x21   :  { %305 = shalt.err (!%p302_p1)
}
  0x22   :  { %33 = dma.hbm_to_vmem [thread:$0]  %s402_s1, 1024, %s28_s24, [#allocation7], %s335_s19, %s335_s19, %s336_s20  }
  0x23   :  { %328 = dma.done.wait [#allocation4], 128  }
  0x24   :  { %329 = vsyncadd [#allocation4], 4294967168 }
  0x25   :  { %330 = dma.done.wait [#allocation7], 1024  }
  0x26   :  { %331 = vsyncadd [#allocation7], 4294966272  ;;  %v338_v0 = vmov 0.0   ;;  %vm339_vm0 = vmmov 0   ;;  %v253_v1 = vld [vmem:[#allocation6] sm:$0xff]   ;;  %v254_v2 = vld [vmem:[#allocation6 + $0x8] sm:$0xff]  }
  0x27   :  { %226 = vmatprep.subr.bf16.mxu0 %v338_v0  ;;  %242 = vmatprep.mubr.msk.bf16.mxu0 %vm339_vm0, %v338_v0  ;;  %v255_v3 = vld [vmem:[#allocation6 + $0x10] sm:$0xff]   ;;  %v256_v4 = vld [vmem:[#allocation6 + $0x18] sm:$0xff]   ;;  %v257_v5 = vld [vmem:[#allocation6 + $0x20] sm:$0xff]   ;;  %s340_s1 = smov [#allocation8]  }
  0x28   :  { %227 = vmatpush3.bf16.msra.mxu0 %v253_v1  ;;  %v258_v6 = vld [vmem:[#allocation6 + $0x28] sm:$0xff]   ;;  %v259_v7 = vld [vmem:[#allocation6 + $0x30] sm:$0xff]   ;;  %v260_v8 = vld [vmem:[#allocation6 + $0x38] sm:$0xff]   ;;  %s186_s6 = sshll.u32 %s340_s1, 4  ;;  %s187_s6 = int_to_ptr.vmem [resolvable:$true] %s186_s6 }
  0x29   :  { %228 = vmatprep.subr.bf16.mxu0 %v338_v0  ;;  %v261_v9 = vld [vmem:[#allocation3] sm:$0xff]   ;;  %s306_s7 = scalar_lea.vmem %s187_s6, 128  ;;  %p311_p3 = scmp.lt.s32.totalorder %s187_s6, %s187_s6 }
  0x2a   :  { %p307_p2 = scmp.ne.s32.totalorder %s187_s6, %s306_s7  ;;  %p312_p4 = scmp.lt.s32.totalorder %s306_s7, %s306_s7 }
  0x2c   :  { %229 = vmatpush3.bf16.msra.mxu0 %v254_v2  ;;  %p313_p5 = por %p312_p4, %p311_p3 }
  0x2d   :  { %230 = vmatprep.subr.bf16.mxu0 %v338_v0 }
  0x2e   :  { %p314_p6 = pnand %p313_p5, %p307_p2 }
  0x30   :  { %231 = vmatpush3.bf16.msra.mxu0 %v255_v3 }
  0x31   :  { %232 = vmatprep.subr.bf16.mxu0 %v338_v0 }
  0x34   :  { %233 = vmatpush3.bf16.msra.mxu0 %v256_v4 }
  0x35   :  { %234 = vmatprep.subr.bf16.mxu0 %v338_v0 }
  0x38   :  { %235 = vmatpush3.bf16.msra.mxu0 %v257_v5 }
  0x39   :  { %236 = vmatprep.subr.bf16.mxu0 %v338_v0 }
  0x3c   :  { %237 = vmatpush3.bf16.msra.mxu0 %v258_v6 }
  0x3d   :  { %238 = vmatprep.subr.bf16.mxu0 %v338_v0 }
  0x40   :  { %239 = vmatpush3.bf16.msra.mxu0 %v259_v7 }
  0x41   :  { %240 = vmatprep.subr.bf16.mxu0 %v338_v0 }
  0x44   :  { %241 = vmatpush3.bf16.msra.mxu0 %v260_v8 }
  0x47   :  { %243 = vmatmul.mubr.bf16.vlgmr.msra.gmra.mrb[0].mxu0 %v261_v9 }
 0x11a   :  { %v155_v10 = vpop.f32.mrb[0].mxu0 }
 0x11b   :  { %v244_v11 = vpop.f32.mrb[1].mxu0 }
 0x11c   :  { %v158_v12 = vpop.f32.mrb[2].mxu0 }
 0x11d   :  { %v215_v13 = vpack.c.bf16 %v158_v12, %v155_v10  ;;  %v245_v14 = vpop.f32.mrb[3].mxu0 }
 0x11f   :  { %216 = vst [vmem:[#allocation8] sm:$0xff] %v215_v13  }
 0x120   :  { %317 = shalt.err (!%p314_p6)
}
 0x121   :  { %s318_s10 = scalar_lea.hbm %s403_s2, 128 }
 0x122   :  { %p319_p7 = scmp.ne.s32.totalorder %s403_s2, %s318_s10  ;;  %p322_p8 = scmp.lt.u32.totalorder %s318_s10, %s403_s2 }
 0x124   :  { %p324_p9 = pnand %p322_p8, %p319_p7 }
 0x126   :  { %327 = shalt.err (!%p324_p9)
}
 0x127   :  { %192 = dma.vmem_to_hbm [thread:$0]  %s187_s6, 128, %s403_s2, [#allocation5], %s335_s19, %s335_s19, %s336_s20  }
 0x128   :  { %332 = dma.done.wait [#allocation5], 128  }
 0x129   :  { %333 = vsyncadd [#allocation5], 4294967168 }
 0x12a   :  { %196 = vsyncpa [#allocation4], 1 }
 0x12b   :  { %197 = vsyncpa [#allocation7], 1 }
 0x12c   :  { %198 = vsyncpa [#allocation5], 1 }

</bundles_post_ra>
